<compile_context>
chip_gen: v5e
topology: v5e:2x2
jax: 0.10.0
libtpu: 0.0.40
codegen_flags: <defaults>
</compile_context>

<pallas_src>
import functools

import jax
import jax.numpy as jnp
from jax.experimental import pallas as pl
from jax.experimental.pallas import tpu as pltpu

_LANE_WIDTH = 384  # lcm(6, 128): 64 six-channel cells per lane-dense row


def _junction_loss_kernel(pred_ref, tgt_ref, out_ref, acc_ref, *,
                          l_coord, l_class, n_batch):
    i = pl.program_id(0)

    @pl.when(i == 0)
    def _():
        acc_ref[...] = jnp.zeros_like(acc_ref)

    p = pred_ref[...].astype(jnp.float32)   # (TB, 384)
    t = tgt_ref[...].astype(jnp.float32)    # (TB, 384)
    d = p - t
    sq = d * d

    # Channel index of each lane (period 6).  Rows start at flat offsets that
    # are multiples of 384 (a multiple of 6), so channel == lane % 6.  Use
    # exact integer-valued f32 math to avoid integer div/rem lowering.
    lw = p.shape[-1]
    lane = jax.lax.broadcasted_iota(jnp.int32, (1, lw), 1).astype(jnp.float32)
    ch = lane - 6.0 * jnp.floor(lane / 6.0)            # (1, 384), values 0..5
    is_conf = ch == 2.0                                # confidence channel
    is_cls = ch > 2.5                                  # channels 3, 4, 5
    is_c3 = ch == 3.0
    is_c4 = ch == 4.0

    # Confidence-channel weight depends only on its own target value:
    #   conf > 0 -> l_coord (coo mask), conf == 0 -> 1 (noo mask), else 0
    # (matches the PyTorch masks, which drop negative-conf cells entirely).
    w_conf = jnp.where(t > 0.0, l_coord, jnp.where(t == 0.0, 1.0, 0.0))

    # Class channels 3/4/5 need the cell confidence, which sits 1/2/3 lanes to
    # the left.  Groups of 6 never straddle the 384-lane row boundary, so the
    # per-row roll wrap is never selected.
    t1 = pltpu.roll(t, 1, axis=1)
    t2 = pltpu.roll(t, 2, axis=1)
    t3 = pltpu.roll(t, 3, axis=1)
    conf_cls = jnp.where(is_c3, t1, jnp.where(is_c4, t2, t3))
    w_cls = jnp.where(conf_cls > 0.0, l_class, 0.0)

    # Channels 0/1 (x, y) get weight 0: the PyTorch module computes
    # cooobj_loss_xy but never uses it in the returned value.
    w = jnp.where(is_conf, w_conf, jnp.where(is_cls, w_cls, 0.0))

    # Single fused weighted reduction, sublane axis only (lanes stay parallel).
    acc_ref[...] += jnp.sum(w * sq, axis=0, keepdims=True)

    @pl.when(i == pl.num_programs(0) - 1)
    def _():
        out_ref[0] = jnp.sum(acc_ref[...]) / jnp.float32(n_batch)


def junction_loss(pred, target, S=16, l_coord=5.0, l_noobj=0.5, l_class=1.0,
                  max_tile_rows=1024):
    """Pallas implementation of junctionLoss(S, l_coord, l_noobj, l_class).forward.

    l_noobj is kept for API parity with the PyTorch module but (as in the
    original return expression) is never used.
    """
    N, S0, S1, C = pred.shape
    assert C == 6 and S0 == S and S1 == S
    assert target.shape == pred.shape

    LW = _LANE_WIDTH
    L = N * S * S * C                       # total flat elements (multiple of 6)
    R = -(-L // LW)                         # lane-dense rows needed
    # Largest tile that stays well inside the 16 MiB (v5e) scoped-VMEM default:
    # 2 inputs x 2 buffers x TB*384*4 B ~= 6 MiB at TB = 1024.
    TB = min(int(max_tile_rows), -(-R // 8) * 8)
    TB = max(8, (TB // 8) * 8)              # multiple of 8 sublanes
    R_pad = -(-R // TB) * TB
    L_pad = R_pad * LW

    pred_f = pred.reshape(-1)
    tgt_f = target.reshape(-1)
    if L_pad != L:
        # Zero padding is loss-neutral: diff == 0 and conf == 0 everywhere.
        pred_f = jnp.pad(pred_f, (0, L_pad - L))
        tgt_f = jnp.pad(tgt_f, (0, L_pad - L))
    pred2 = pred_f.reshape(R_pad, LW)
    tgt2 = tgt_f.reshape(R_pad, LW)

    kernel = functools.partial(
        _junction_loss_kernel,
        l_coord=float(l_coord), l_class=float(l_class), n_batch=int(N))

    out = pl.pallas_call(
        kernel,
        out_shape=jax.ShapeDtypeStruct((1,), jnp.float32),
        grid_spec=pltpu.PrefetchScalarGridSpec(
            num_scalar_prefetch=0,
            grid=(R_pad // TB,),
            in_specs=[pl.BlockSpec((TB, LW), lambda i: (i, 0)),
                      pl.BlockSpec((TB, LW), lambda i: (i, 0))],
            out_specs=pl.BlockSpec(memory_space=pltpu.SMEM),
            scratch_shapes=[pltpu.VMEM((1, LW), jnp.float32)],
        ),
        compiler_params=pltpu.CompilerParams(
            dimension_semantics=("arbitrary",)),
    )(pred2, tgt2)
    return out[0]


def junction_loss_ref(pred, target, l_coord=5.0, l_noobj=0.5, l_class=1.0):
    """Pure-JAX reference mirroring the PyTorch forward."""
    N = pred.shape[0]
    conf_t = target[..., 2]
    coo = conf_t > 0
    noo = conf_t == 0
    sq = (pred - target) ** 2
    noo_loss = jnp.sum(jnp.where(noo, sq[..., 2], 0.0))
    coo_loss_c = jnp.sum(jnp.where(coo, sq[..., 2], 0.0))
    class_loss = jnp.sum(jnp.where(coo[..., None], sq[..., 3:6], 0.0))
    return (l_coord * coo_loss_c + noo_loss + l_class * class_loss) / N


def _make_inputs(key, N, S):
    k1, k2, k3, k4 = jax.random.split(key, 4)
    pred = jax.random.uniform(k1, (N, S, S, 6), dtype=jnp.float32)
    xy = jax.random.uniform(k2, (N, S, S, 2), dtype=jnp.float32)
    conf = (jax.random.uniform(k3, (N, S, S, 1)) > 0.5).astype(jnp.float32)
    cls_idx = jax.random.randint(k4, (N, S, S), 0, 3)
    onehot = jax.nn.one_hot(cls_idx, 3, dtype=jnp.float32)
    target = jnp.concatenate([xy, conf, onehot], axis=-1)
    return pred, target


if __name__ == "__main__":
    key = jax.random.PRNGKey(0)
    S = 16

    # Case 1: single-tile path (N=2 -> 8 lane-dense rows, grid of 1).
    pred, target = _make_inputs(key, 2, S)
    out = junction_loss(pred, target, S=S, l_coord=5.0, l_noobj=0.5, l_class=1.0)
    out = jax.block_until_ready(out)
    ref = junction_loss_ref(pred, target, l_coord=5.0, l_noobj=0.5, l_class=1.0)
    assert jnp.allclose(out, ref, rtol=1e-5, atol=1e-5), (out, ref)

    # Case 2: multi-step grid + tail padding (N=3, forced small tile).
    pred2, target2 = _make_inputs(jax.random.PRNGKey(1), 3, S)
    out2 = junction_loss(pred2, target2, S=S, l_coord=5.0, l_noobj=0.5,
                         l_class=1.0, max_tile_rows=8)
    out2 = jax.block_until_ready(out2)
    ref2 = junction_loss_ref(pred2, target2, l_coord=5.0, l_noobj=0.5, l_class=1.0)
    assert jnp.allclose(out2, ref2, rtol=1e-5, atol=1e-5), (out2, ref2)

    print("KERNEL_OK")
</pallas_src>

<mosaic_0001>
module attributes {stable_mosaic.version = 11 : i64} {
  func.func @_junction_loss_kernel(%arg0: i32, %arg1: memref<8x384xf32, #tpu.memory_space<vmem>>, %arg2: memref<8x384xf32, #tpu.memory_space<vmem>>, %arg3: memref<1xf32, #tpu.memory_space<smem>>, %arg4: memref<1x384xf32, #tpu.memory_space<vmem>>) attributes {dimension_semantics = [#tpu.dimension_semantics<arbitrary>], iteration_bounds = array<i64: 1>, scalar_prefetch = 0 : i64, scratch_operands = 1 : i64, tpu.core_type = #tpu.core_type<tc>, window_params = [{transform_indices = @transform_0, window_bounds = array<i64: 8, 384>}, {transform_indices = @transform_1, window_bounds = array<i64: 8, 384>}, {transform_indices = @transform_2, window_bounds = array<i64: 1>}]} {
    %c0_i32 = arith.constant 0 : i32
    %0 = arith.cmpi eq, %arg0, %c0_i32 : i32
    %1 = arith.extui %0 : i1 to i32
    %c0_i32_0 = arith.constant 0 : i32
    %2 = arith.cmpi ne, %1, %c0_i32_0 : i32
    scf.if %2 {
      %cst_25 = arith.constant 0.000000e+00 : f32
      %62 = vector.broadcast %cst_25 : f32 to vector<1x384xf32>
      %c0_26 = arith.constant 0 : index
      %c0_27 = arith.constant 0 : index
      %63 = vector.load %arg4[%c0_26, %c0_27] : memref<1x384xf32, #tpu.memory_space<vmem>>, vector<1x384xf32>
      tpu.vector_store %arg4[%c0_26, %c0_27], %62 {strides = array<i32>} : memref<1x384xf32, #tpu.memory_space<vmem>>, vector<1x384xf32>,
    } else {
    }
    %c0 = arith.constant 0 : index
    %c0_1 = arith.constant 0 : index
    %3 = vector.load %arg1[%c0, %c0_1] : memref<8x384xf32, #tpu.memory_space<vmem>>, vector<8x384xf32>
    %c0_2 = arith.constant 0 : index
    %c0_3 = arith.constant 0 : index
    %4 = vector.load %arg2[%c0_2, %c0_3] : memref<8x384xf32, #tpu.memory_space<vmem>>, vector<8x384xf32>
    %5 = arith.subf %3, %4 : vector<8x384xf32>
    %6 = arith.mulf %5, %5 : vector<8x384xf32>
    %7 = tpu.iota {dimensions = array<i32: 1>} : vector<1x384xi32>
    %8 = arith.sitofp %7 : vector<1x384xi32> to vector<1x384xf32>
    %cst = arith.constant 6.000000e+00 : f32
    %9 = vector.broadcast %cst : f32 to vector<1x384xf32>
    %10 = arith.divf %8, %9 : vector<1x384xf32>
    %11 = math.floor %10 : vector<1x384xf32>
    %cst_4 = arith.constant 6.000000e+00 : f32
    %12 = vector.broadcast %cst_4 : f32 to vector<1x384xf32>
    %13 = arith.mulf %12, %11 : vector<1x384xf32>
    %14 = arith.subf %8, %13 : vector<1x384xf32>
    %cst_5 = arith.constant 2.000000e+00 : f32
    %15 = vector.broadcast %cst_5 : f32 to vector<1x384xf32>
    %16 = arith.cmpf oeq, %14, %15 : vector<1x384xf32>
    %cst_6 = arith.constant 2.500000e+00 : f32
    %17 = vector.broadcast %cst_6 : f32 to vector<1x384xf32>
    %18 = arith.cmpf ogt, %14, %17 : vector<1x384xf32>
    %cst_7 = arith.constant 3.000000e+00 : f32
    %19 = vector.broadcast %cst_7 : f32 to vector<1x384xf32>
    %20 = arith.cmpf oeq, %14, %19 : vector<1x384xf32>
    %cst_8 = arith.constant 4.000000e+00 : f32
    %21 = vector.broadcast %cst_8 : f32 to vector<1x384xf32>
    %22 = arith.cmpf oeq, %14, %21 : vector<1x384xf32>
    %cst_9 = arith.constant 0.000000e+00 : f32
    %23 = vector.broadcast %cst_9 : f32 to vector<8x384xf32>
    %24 = arith.cmpf ogt, %4, %23 : vector<8x384xf32>
    %cst_10 = arith.constant 0.000000e+00 : f32
    %25 = vector.broadcast %cst_10 : f32 to vector<8x384xf32>
    %26 = arith.cmpf oeq, %4, %25 : vector<8x384xf32>
    %cst_11 = arith.constant 1.000000e+00 : f32
    %cst_12 = arith.constant 0.000000e+00 : f32
    %27 = vector.broadcast %cst_11 : f32 to vector<8x384xf32>
    %28 = vector.broadcast %cst_12 : f32 to vector<8x384xf32>
    %29 = arith.select %26, %27, %28 : vector<8x384xi1>, vector<8x384xf32>
    %cst_13 = arith.constant 5.000000e+00 : f32
    %30 = vector.broadcast %cst_13 : f32 to vector<8x384xf32>
    %31 = arith.select %24, %30, %29 : vector<8x384xi1>, vector<8x384xf32>
    %c1_i32 = arith.constant 1 : i32
    %32 = tpu.dynamic_rotate %4 by %c1_i32 dim 1 : vector<8x384xf32>, i32 -> vector<8x384xf32>
    %c2_i32 = arith.constant 2 : i32
    %33 = tpu.dynamic_rotate %4 by %c2_i32 dim 1 : vector<8x384xf32>, i32 -> vector<8x384xf32>
    %c3_i32 = arith.constant 3 : i32
    %34 = tpu.dynamic_rotate %4 by %c3_i32 dim 1 : vector<8x384xf32>, i32 -> vector<8x384xf32>
    %35 = vector.shape_cast %22 : vector<1x384xi1> to vector<1x384xi1>
    %36 = vector.broadcast %35 : vector<1x384xi1> to vector<8x384xi1>
    %37 = arith.select %36, %33, %34 : vector<8x384xi1>, vector<8x384xf32>
    %38 = vector.shape_cast %20 : vector<1x384xi1> to vector<1x384xi1>
    %39 = vector.broadcast %38 : vector<1x384xi1> to vector<8x384xi1>
    %40 = arith.select %39, %32, %37 : vector<8x384xi1>, vector<8x384xf32>
    %cst_14 = arith.constant 0.000000e+00 : f32
    %41 = vector.broadcast %cst_14 : f32 to vector<8x384xf32>
    %42 = arith.cmpf ogt, %40, %41 : vector<8x384xf32>
    %cst_15 = arith.constant 1.000000e+00 : f32
    %cst_16 = arith.constant 0.000000e+00 : f32
    %43 = vector.broadcast %cst_15 : f32 to vector<8x384xf32>
    %44 = vector.broadcast %cst_16 : f32 to vector<8x384xf32>
    %45 = arith.select %42, %43, %44 : vector<8x384xi1>, vector<8x384xf32>
    %cst_17 = arith.constant 0.000000e+00 : f32
    %46 = vector.shape_cast %18 : vector<1x384xi1> to vector<1x384xi1>
    %47 = vector.broadcast %46 : vector<1x384xi1> to vector<8x384xi1>
    %48 = vector.broadcast %cst_17 : f32 to vector<8x384xf32>
    %49 = arith.select %47, %45, %48 : vector<8x384xi1>, vector<8x384xf32>
    %50 = vector.shape_cast %16 : vector<1x384xi1> to vector<1x384xi1>
    %51 = vector.broadcast %50 : vector<1x384xi1> to vector<8x384xi1>
    %52 = arith.select %51, %31, %49 : vector<8x384xi1>, vector<8x384xf32>
    %c0_18 = arith.constant 0 : index
    %c0_19 = arith.constant 0 : index
    %53 = vector.load %arg4[%c0_18, %c0_19] : memref<1x384xf32, #tpu.memory_space<vmem>>, vector<1x384xf32>
    %54 = arith.mulf %52, %6 : vector<8x384xf32>
    %cst_20 = arith.constant dense<0.000000e+00> : vector<384xf32>
    %55 = vector.multi_reduction <add>, %54, %cst_20 [0] : vector<8x384xf32> to vector<384xf32>
    %56 = vector.shape_cast %55 : vector<384xf32> to vector<1x384xf32>
    %57 = arith.addf %53, %56 : vector<1x384xf32>
    %c0_21 = arith.constant 0 : index
    %c0_22 = arith.constant 0 : index
    %58 = vector.load %arg4[%c0_21, %c0_22] : memref<1x384xf32, #tpu.memory_space<vmem>>, vector<1x384xf32>
    tpu.vector_store %arg4[%c0_21, %c0_22], %57 {strides = array<i32>} : memref<1x384xf32, #tpu.memory_space<vmem>>, vector<1x384xf32>,
    %c0_i32_23 = arith.constant 0 : i32
    %59 = arith.cmpi eq, %arg0, %c0_i32_23 : i32
    %60 = arith.extui %59 : i1 to i32
    %c0_i32_24 = arith.constant 0 : i32
    %61 = arith.cmpi ne, %60, %c0_i32_24 : i32
    scf.if %61 {
      %c0_25 = arith.constant 0 : index
      %c0_26 = arith.constant 0 : index
      %62 = vector.load %arg4[%c0_25, %c0_26] : memref<1x384xf32, #tpu.memory_space<vmem>>, vector<1x384xf32>
      %63 = vector.shape_cast %62 : vector<1x384xf32> to vector<1x1x384xf32>
      %cst_27 = arith.constant dense<0.000000e+00> : vector<1xf32>
      %64 = vector.multi_reduction <add>, %63, %cst_27 [1, 2] : vector<1x1x384xf32> to vector<1xf32>
      %65 = vector.shape_cast %64 : vector<1xf32> to vector<1x1x1xf32>
      %66 = vector.extract %65[0, 0, 0] : f32 from vector<1x1x1xf32>
      %cst_28 = arith.constant 2.000000e+00 : f32
      %67 = arith.divf %66, %cst_28 : f32
      %c0_29 = arith.constant 0 : index
      %68 = memref.load %arg3[%c0_29] : memref<1xf32, #tpu.memory_space<smem>>
      memref.store %67, %arg3[%c0_29] : memref<1xf32, #tpu.memory_space<smem>>
    } else {
    }
    return
  }
  func.func @transform_0(%arg0: i32) -> (i32, i32) {
    %c0_i32 = arith.constant 0 : i32
    %c0_i32_0 = arith.constant 0 : i32
    return %arg0, %c0_i32 : i32, i32
  }
  func.func @transform_1(%arg0: i32) -> (i32, i32) {
    %c0_i32 = arith.constant 0 : i32
    %c0_i32_0 = arith.constant 0 : i32
    return %arg0, %c0_i32 : i32, i32
  }
  func.func @transform_2(%arg0: i32) -> i32 {
    %c0_i32 = arith.constant 0 : i32
    %c0_i32_0 = arith.constant 0 : i32
    return %c0_i32 : i32
  }
}

</mosaic_0001>

<bundles_post_ra>
// kernel: tpu_custom_call.1
= control target key start
LH: loop header
LB: loop body
LE: loop exit
PB: predicated region body
PF: predicated region fallthrough
CT: control target
= control target key end

     0   :  { %7 = vsyncpa [#allocation4], 0  ;;  %s486_s0 = inlined_call_operand.hbm [shape: f32[8,384], index: 0, kind: input, shape index: {}]   ;;  %s487_s1 = inlined_call_operand.hbm [shape: f32[8,384], index: 1, kind: input, shape index: {}]   ;;  %s488_s2 = inlined_call_operand.hbm [shape: f32[1], index: 2, kind: output, shape index: {}]  }
   0x1   :  { %8 = vsyncpa [#allocation7], 0 }
   0x2   :  { %9 = vsyncpa [#allocation5], 0  ;;  %s15_s11 = sshll.u32 %s486_s0, 4  ;;  %s357_s12 = smov [#allocation3]   ;;  %s16_s11 = int_to_ptr.hbm [resolvable:$true] %s15_s11 }
   0x3   :  { %s17_s13 = sshll.u32 %s357_s12, 4  ;;  %s26_s16 = sshll.u32 %s487_s1, 4  ;;  %s18_s13 = int_to_ptr.vmem [resolvable:$true] %s17_s13  ;;  %s27_s16 = int_to_ptr.hbm [resolvable:$true] %s26_s16 }
   0x4   :  { %20 = dma.hbm_to_vmem [thread:$0]  %s16_s11, 384, %s18_s13, [#allocation4]  }
   0x5   :  { %s358_s17 = smov [#allocation6]  }
   0x6   :  { %s28_s18 = sshll.u32 %s358_s17, 4  ;;  %s29_s18 = int_to_ptr.vmem [resolvable:$true] %s28_s18 }
   0x7   :  { %31 = dma.hbm_to_vmem [thread:$0]  %s27_s16, 384, %s29_s18, [#allocation7]  }
   0x8   :  { %351 = dma.done.wait [#allocation4], 384  }
   0x9   :  { %352 = vsyncadd [#allocation4], 4294966912 }
   0xa   :  { %353 = dma.done.wait [#allocation7], 384  }
   0xb   :  { %354 = vsyncadd [#allocation7], 4294966912  ;;  %v387_v0 = vld [vmem:[#allocation6] sm:$0xff]  ;;  %s359_s0 = smov 3   ;;  %s360_s19 = smov 2   ;;  %v53_v1 = vld [vmem:[#allocation6 + $0x8] sm:$0xff]  ;;  %v44_v6 = vlaneseq }
   0xc   :  { %131 = vrot.lane.b32.xlu1 %v387_v0, %s359_s0  ;;  %121 = vrot.lane.b32.xlu0 %v387_v0, %s360_s19  ;;  %s361_s20 = smov 1   ;;  %v392_v2 = vld [vmem:[#allocation6 + $0x10] sm:$0xff]  ;;  %v362_v3 = vmov 6.0   ;;  %v363_v10 = vmov 0.0   ;;  %vm103_vm2 = vcmp.eq.f32.partialorder %v53_v1, 0.0  ;;  %vm100_vm6 = vcmp.gt.f32.partialorder %v53_v1, 0.0 }
   0xd   :  { %111 = vrot.lane.b32.xlu2 %v387_v0, %s361_s20  ;;  %287 = vrcp.f32 %v362_v3  ;;  %vm397_vm0 = vcmp.lt.s32.totalorder %v44_v6, 384  ;;  %v401_v9 = vand.u32 127, %v44_v6  ;;  %v50_v32 = vld [vmem:[#allocation3 + $0x8] sm:$0xff]  ;;  %v106_v34 = vsel %vm103_vm2, 1.0, %v363_v10  ;;  %v49_v45 = vld [vmem:[#allocation3] sm:$0xff]  ;;  %v51_v48 = vld [vmem:[#allocation3 + $0x10] sm:$0xff] }
   0xe   :  { %48 = vst.msk [vmem:[#allocation2] sm:$0x7] %vm397_vm0, %v363_v10  ;;  %v56_v35 = vsub.f32 %v50_v32, %v53_v1  ;;  %vm104_vm10 = vcmp.eq.f32.partialorder %v392_v2, 0.0  ;;  %v109_v43 = vsel %vm100_vm6, 5.0, %v106_v34  ;;  %v55_v51 = vsub.f32 %v49_v45, %v387_v0  ;;  %s262_s22 = sshll.u32 %s488_s2, 4  ;;  %s365_s26 = smov [#allocation8]   ;;  %s263_s22 = int_to_ptr.hbm [resolvable:$true] %s262_s22 }
   0xf   :  { %v63_v12 = vadd.s32 128, %v401_v9  ;;  %v64_v16 = vadd.s32 256, %v401_v9  ;;  %v65_v18 = vcvt.s32.f32 %v401_v9  ;;  %vm117_vm3 = vcmp.lt.s32.totalorder %v401_v9, 1 }
  0x10   :  { %vm137_vm4 = vcmp.lt.s32.totalorder %v401_v9, 3  ;;  %vm127_vm7 = vcmp.lt.s32.totalorder %v401_v9, 2  ;;  %v59_v46 = vmul.f32 %v56_v35, %v56_v35  ;;  %v107_v49 = vsel %vm104_vm10, 1.0, %v363_v10 }
  0x11   :  { %v66_v14 = vcvt.s32.f32 %v63_v12  ;;  %v67_v19 = vcvt.s32.f32 %v64_v16  ;;  %v57_v53 = vsub.f32 %v51_v48, %v392_v2  ;;  %v58_v6 = vmul.f32 %v55_v51, %v55_v51 }
  0x13   :  { %v288_v4 = vpop.eup %287 }
  0x14   :  { %133 = vrot.lane.b32.xlu1 %v53_v1, %s359_s0  ;;  %123 = vrot.lane.b32.xlu0 %v53_v1, %s360_s19  ;;  %v69_v5 = vmul.f32 6.0, %v288_v4  ;;  %vm73_vm1 = vweird.f32 %v288_v4 }
  0x15   :  { %113 = vrot.lane.b32.xlu2 %v53_v1, %s361_s20 }
  0x16   :  { %v70_v8 = vsub.f32 1.0, %v69_v5 }
  0x18   :  { %v71_v11 = vmul.f32 %v288_v4, %v70_v8  ;;  %v60_v8 = vmul.f32 %v57_v53, %v57_v53 }
  0x1a   :  { %v72_v13 = vadd.f32 %v288_v4, %v71_v11 }
  0x1c   :  { %135 = vrot.lane.b32.xlu1 %v392_v2, %s359_s0  ;;  %125 = vrot.lane.b32.xlu0 %v392_v2, %s360_s19  ;;  %v74_v15 = vsel %vm73_vm1, %v288_v4, %v72_v13  ;;  %vm101_vm1 = vcmp.gt.f32.partialorder %v392_v2, 0.0 }
  0x1d   :  { %115 = vrot.lane.b32.xlu2 %v392_v2, %s361_s20  ;;  %v76_v17 = vmul.f32 %v74_v15, %v66_v14  ;;  %v75_v22 = vmul.f32 %v74_v15, %v65_v18  ;;  %v77_v23 = vmul.f32 %v74_v15, %v67_v19  ;;  %v110_v56 = vsel %vm101_vm1, 5.0, %v107_v49 }
  0x1f   :  { %v79_v20 = vfloor.f32 %v76_v17  ;;  %v78_v25 = vfloor.f32 %v75_v22  ;;  %v80_v26 = vfloor.f32 %v77_v23 }
  0x21   :  { %v82_v24 = vmul.f32 6.0, %v79_v20  ;;  %v81_v30 = vmul.f32 6.0, %v78_v25  ;;  %v83_v31 = vmul.f32 6.0, %v80_v26 }
  0x23   :  { %v85_v29 = vsub.f32 %v66_v14, %v82_v24  ;;  %v415_v36 = vsub.f32 %v65_v18, %v81_v30  ;;  %v417_v37 = vsub.f32 %v67_v19, %v83_v31 }
  0x25   :  { %vm97_vm5 = vcmp.eq.f32.partialorder %v85_v29, 4.0  ;;  %vm94_vm8 = vcmp.eq.f32.partialorder %v85_v29, 3.0  ;;  %vm88_vm9 = vcmp.eq.f32.partialorder %v85_v29, 2.0  ;;  %vm91_vm11 = vcmp.gt.f32.partialorder %v85_v29, 2.5 }
  0x26   :  { %vm93_vm12 = vcmp.eq.f32.partialorder %v415_v36, 3.0  ;;  %vm95_vm13 = vcmp.eq.f32.partialorder %v417_v37, 3.0  ;;  %vm96_vm15 = vcmp.eq.f32.partialorder %v415_v36, 4.0  ;;  %vm98_vm2 = vcmp.eq.f32.partialorder %v417_v37, 4.0 }
  0x27   :  { %vm90_vm6 = vcmp.gt.f32.partialorder %v415_v36, 2.5  ;;  %vm87_vm10 = vcmp.eq.f32.partialorder %v415_v36, 2.0 }
  0x67   :  { %v409_v21 = vpop.permute.xlu2 %111 }
  0x6f   :  { %v114_v33 = vpop.permute.xlu2 %113 }
  0x70   :  { %v119_v42 = vsel %vm117_vm3, %v409_v21, %v114_v33 }
  0x77   :  { %v116_v54 = vpop.permute.xlu2 %115 }
  0x78   :  { %v118_v57 = vsel %vm117_vm3, %v114_v33, %v116_v54  ;;  %v120_v3 = vsel %vm117_vm3, %v116_v54, %v409_v21  ;;  %vm210_vm3 = vcmask 1040384  }
  0x7e   :  { %v132_v27 = vpop.permute.xlu1 %131  ;;  %v122_v28 = vpop.permute.xlu0 %121 }
  0x86   :  { %v134_v38 = vpop.permute.xlu1 %133  ;;  %v124_v39 = vpop.permute.xlu0 %123 }
  0x87   :  { %v139_v40 = vsel %vm137_vm4, %v132_v27, %v134_v38  ;;  %v129_v41 = vsel %vm127_vm7, %v122_v28, %v124_v39 }
  0x88   :  { %v148_v44 = vsel %vm97_vm5, %v129_v41, %v139_v40  ;;  %vm102_vm5 = vcmp.eq.f32.partialorder %v387_v0, 0.0 }
  0x89   :  { %v157_v47 = vsel %vm94_vm8, %v119_v42, %v148_v44  ;;  %vm92_vm8 = vcmp.gt.f32.partialorder %v417_v37, 2.5  ;;  %v105_v61 = vsel %vm102_vm5, 1.0, %v363_v10 }
  0x8a   :  { %vm160_vm14 = vcmp.gt.f32.partialorder %v157_v47, 0.0 }
  0x8b   :  { %v163_v50 = vsel %vm160_vm14, 1.0, %v363_v10  ;;  %vm89_vm14 = vcmp.eq.f32.partialorder %v417_v37, 2.0 }
  0x8c   :  { %v172_v52 = vsel %vm91_vm11, %v163_v50, 0.0  ;;  %vm99_vm11 = vcmp.gt.f32.partialorder %v387_v0, 0.0 }
  0x8d   :  { %v181_v55 = vsel %vm88_vm9, %v109_v43, %v172_v52  ;;  %v108_v14 = vsel %vm99_vm11, 5.0, %v105_v61  ;;  %vm212_vm9 = vcmask 1041408   ;;  %v364_v52 = vmov 2.0  }
  0x8e   :  { %v185_v58 = vmul.f32 %v181_v55, %v59_v46  ;;  %v136_v59 = vpop.permute.xlu1 %135  ;;  %v126_v60 = vpop.permute.xlu0 %125  ;;  %289 = vrcp.f32 %v364_v52 }
  0x8f   :  { %v138_v62 = vsel %vm137_vm4, %v134_v38, %v136_v59  ;;  %v140_v63 = vsel %vm137_vm4, %v136_v59, %v132_v27  ;;  %v128_v1 = vsel %vm127_vm7, %v124_v39, %v126_v60  ;;  %v130_v2 = vsel %vm127_vm7, %v126_v60, %v122_v28  ;;  %v183_v38 = vld [vmem:[#allocation2] sm:$0x7] }
  0x90   :  { %v193_v4 = vrot.slane %v185_v58, 4  ;;  %v147_v0 = vsel %vm96_vm15, %v130_v2, %v140_v63  ;;  %v149_v5 = vsel %vm98_vm2, %v128_v1, %v138_v62 }
  0x91   :  { %v156_v11 = vsel %vm93_vm12, %v120_v3, %v147_v0  ;;  %v158_v12 = vsel %vm95_vm13, %v118_v57, %v149_v5 }
  0x92   :  { %v194_v13 = vadd.f32 %v193_v4, %v185_v58  ;;  %vm159_vm4 = vcmp.gt.f32.partialorder %v156_v11, 0.0  ;;  %vm161_vm7 = vcmp.gt.f32.partialorder %v158_v12, 0.0 }
  0x93   :  { %v162_v9 = vsel %vm159_vm4, 1.0, %v363_v10  ;;  %v164_v15 = vsel %vm161_vm7, 1.0, %v363_v10 }
  0x94   :  { %v195_v16 = vrot.slane %v194_v13, 2  ;;  %v171_v17 = vsel %vm90_vm6, %v162_v9, 0.0  ;;  %v173_v18 = vsel %vm92_vm8, %v164_v15, 0.0  ;;  %v290_v53 = vpop.eup %289 }
  0x95   :  { %v180_v19 = vsel %vm87_vm10, %v108_v14, %v171_v17  ;;  %v182_v20 = vsel %vm89_vm14, %v110_v56, %v173_v18  ;;  %v247_v54 = vmul.f32 2.0, %v290_v53 }
  0x96   :  { %v196_v21 = vadd.f32 %v195_v16, %v194_v13  ;;  %v184_v22 = vmul.f32 %v180_v19, %v58_v6  ;;  %v186_v23 = vmul.f32 %v182_v20, %v60_v8 }
  0x97   :  { %v248_v55 = vsub.f32 1.0, %v247_v54 }
  0x98   :  { %v187_v24 = vrot.slane %v184_v22, 4  ;;  %v199_v25 = vrot.slane %v186_v23, 4  ;;  %v197_v27 = vrot.slane %v196_v21, 1 }
  0x99   :  { %v249_v58 = vmul.f32 %v290_v53, %v248_v55 }
  0x9a   :  { %v188_v26 = vadd.f32 %v187_v24, %v184_v22  ;;  %v200_v10 = vadd.f32 %v199_v25, %v186_v23  ;;  %v198_v32 = vadd.f32 %v197_v27, %v196_v21 }
  0x9b   :  { %v250_v61 = vadd.f32 %v290_v53, %v249_v58 }
  0x9c   :  { %v189_v28 = vrot.slane %v188_v26, 2  ;;  %v201_v29 = vrot.slane %v200_v10, 2  ;;  %v208_v37 = vrot.slane %v198_v32, 7 }
  0x9e   :  { %v190_v30 = vadd.f32 %v189_v28, %v188_v26  ;;  %v202_v31 = vadd.f32 %v201_v29, %v200_v10 }
  0xa0   :  { %v203_v33 = vrot.slane %v202_v31, 1  ;;  %v191_v34 = vrot.slane %v190_v30, 1 }
  0xa2   :  { %v192_v35 = vadd.f32 %v191_v34, %v190_v30  ;;  %v204_v36 = vadd.f32 %v203_v33, %v202_v31 }
  0xa4   :  { %v209_v39 = vrot.slane %v204_v36, 6  ;;  %v211_v40 = vsel %vm210_vm3, %v192_v35, %v208_v37 }
  0xa6   :  { %v213_v41 = vsel %vm212_vm9, %v211_v40, %v209_v39 }
  0xa7   :  { %v215_v42 = vadd.f32 %v213_v41, %v183_v38 }
  0xa9   :  { %220 = vst.msk [vmem:[#allocation2] sm:$0x7] %vm397_vm0, %v215_v42  ;;  %vm251_vm0 = vweird.f32 %v290_v53 }
  0xaa   :  { %v252_v1 = vsel %vm251_vm0, %v290_v53, %v250_v61 }
  0xb0   :  { %v224_v43 = vld [vmem:[#allocation2] sm:$0x7] }
  0xb1   :  { %v226_v44 = vperm.slane %v224_v43, 0  ;;  %v227_v45 = vperm.slane %v224_v43, 1  ;;  %v228_v46 = vperm.slane %v224_v43, 2 }
  0xb3   :  { %v232_v47 = vsel %vm210_vm3, %v226_v44, 0.0  ;;  %v233_v48 = vsel %vm210_vm3, %v227_v45, 0.0  ;;  %v235_v50 = vsel %vm210_vm3, %v228_v46, 0.0 }
  0xb4   :  { %v234_v49 = vadd.f32 %v233_v48, %v232_v47 }
  0xb6   :  { %v236_v51 = vadd.f32 %v235_v50, %v234_v49 }
  0xb8   :  { %237 = vadd.xlane.f32.xlu0 %v236_v51 }
 0x12b   :  { %v238_v7 = vpop.xlane.xlu0 %237 }
 0x12c   :  { %v239_v56 = vrot.slane %v238_v7, 4 }
 0x12e   :  { %v240_v57 = vadd.f32 %v239_v56, %v238_v7 }
 0x130   :  { %v241_v59 = vrot.slane %v240_v57, 2 }
 0x132   :  { %v242_v60 = vadd.f32 %v241_v59, %v240_v57 }
 0x134   :  { %v243_v62 = vrot.slane %v242_v60, 1 }
 0x136   :  { %v244_v63 = vadd.f32 %v243_v62, %v242_v60 }
 0x138   :  { %274 = vpush %v244_v63 }
 0x139   :  { %276 = vpush %v252_v1 }
 0x169   :  { %s275_s23 = spop %274 }
 0x16a   :  { %s277_s24 = spop %276 }
 0x16b   :  { %s254_s25 = smul.f32 %s277_s24, %s275_s23 }
 0x16d   :  { %256 = sst [smem:[#allocation8]] %s254_s25 }
 0x16e   :  { %265 = dma.smem_to_hbm %s365_s26, 16, %s263_s22, [#allocation5]  }
 0x16f   :  { %355 = dma.done.wait [#allocation5], 16  }
 0x170   :  { %356 = vsyncadd [#allocation5], 4294967280 }
 0x171   :  { %270 = sfence }
 0x172   :  { %271 = vsyncpa [#allocation4], 1 }
 0x173   :  { %272 = vsyncpa [#allocation7], 1 }
 0x174   :  { %273 = vsyncpa [#allocation5], 1 }

</bundles_post_ra>
